<compile_context>
chip_gen: v6e
topology: v6e:2x2x1
jax: 0.10.0
libtpu: 0.0.40
codegen_flags: <defaults>
</compile_context>

<pallas_src>
import functools

import jax
import jax.numpy as jnp
from jax import lax
from jax.experimental import pallas as pl
from jax.experimental.pallas import tpu as pltpu


def _round_up(x, m):
    return ((x + m - 1) // m) * m


def _cp_score_kernel(lhs_ref, rel_ref, rhs_ref, o_ref, *, compute_dtype):
    # q = lhs * rel                    (VPU)
    # scores = q @ rhs^T  (NT matmul)  (MXU, f32 accumulate)
    q = (lhs_ref[...] * rel_ref[...]).astype(compute_dtype)
    r = rhs_ref[...].astype(compute_dtype)
    o_ref[...] = lax.dot_general(
        q, r,
        dimension_numbers=(((1,), (1,)), ((), ())),
        preferred_element_type=jnp.float32,
    ).astype(o_ref.dtype)


def cp_forward(x, params, *, block_b=None, block_n=None,
               vmem_budget_bytes=40 * 1024 * 1024, matmul_dtype=None):
    """CP.forward.

    x:      [B, 3] int32 (head, relation, tail) indices.
    params: dict with 'lhs' [n_ent, rank], 'rel' [n_rel, rank], 'rhs' [n_ent, rank].
    Returns (scores [B, n_ent], (lhs_e, rel_e, rhs_e)).
    """
    lhs_w, rel_w, rhs_w = params["lhs"], params["rel"], params["rhs"]
    n_ent, rank = rhs_w.shape
    B = x.shape[0]
    out_dtype = lhs_w.dtype
    itemsize = jnp.dtype(out_dtype).itemsize
    compute_dtype = out_dtype if matmul_dtype is None else matmul_dtype

    # Embedding lookups (XLA gather). Two of these are also returned values.
    # TODO(synk): data-dependent per-row gathers have no efficient blocked
    # BlockSpec form, so they stay in the wrapper.
    lhs_e = jnp.take(lhs_w, x[:, 0], axis=0)   # [B, rank]
    rel_e = jnp.take(rel_w, x[:, 1], axis=0)   # [B, rank]
    rhs_e = jnp.take(rhs_w, x[:, 2], axis=0)   # [B, rank]

    # ---- tile selection --------------------------------------------------
    if block_b is None:
        b_resident = _round_up(B, 8)
        if b_resident * rank * itemsize <= 8 * 1024 * 1024:
            # Whole batch resident -> weight matrix streamed exactly once.
            block_b = b_resident
        else:
            block_b = 256          # fills the 256-wide MXU on v6e/v7x
    block_b = max(8, min(_round_up(block_b, 8), _round_up(B, 8)))

    if block_n is None:
        block_n = 512              # lane-dense, amortizes per-step overhead
    block_n = max(128, min(_round_up(block_n, 128), _round_up(n_ent, 128)))

    def _vmem_need(bb, bn):
        # Double-buffered lhs + rel + rhs + out tiles.
        return 2 * (2 * bb * rank + bn * rank + bb * bn) * itemsize

    # Respect the VMEM budget (v7x has 64 MiB physical / 32 MiB scoped default).
    while _vmem_need(block_b, block_n) > vmem_budget_bytes and block_n > 128:
        block_n = max(128, block_n - 128)
    while _vmem_need(block_b, block_n) > vmem_budget_bytes and block_b > 8:
        block_b = max(8, _round_up(block_b // 2, 8))

    # ---- pad to tile multiples (no-op when already divisible) -------------
    B_pad = _round_up(B, block_b)
    n_pad = _round_up(n_ent, block_n)
    lhs_p = lhs_e if B_pad == B else jnp.pad(lhs_e, ((0, B_pad - B), (0, 0)))
    rel_p = rel_e if B_pad == B else jnp.pad(rel_e, ((0, B_pad - B), (0, 0)))
    rhs_p = rhs_w if n_pad == n_ent else jnp.pad(rhs_w, ((0, n_pad - n_ent), (0, 0)))

    grid = (B_pad // block_b, n_pad // block_n)
    kernel = functools.partial(_cp_score_kernel, compute_dtype=compute_dtype)
    vmem_limit = int(max(_vmem_need(block_b, block_n) + (4 << 20), 32 << 20))

    scores = pl.pallas_call(
        kernel,
        out_shape=jax.ShapeDtypeStruct((B_pad, n_pad), out_dtype),
        grid=grid,
        in_specs=[
            pl.BlockSpec((block_b, rank), lambda i, j: (i, 0)),   # lhs*? query rows
            pl.BlockSpec((block_b, rank), lambda i, j: (i, 0)),   # rel rows
            pl.BlockSpec((block_n, rank), lambda i, j: (j, 0)),   # rhs rows (no transpose)
        ],
        out_specs=pl.BlockSpec((block_b, block_n), lambda i, j: (i, j)),
        compiler_params=pltpu.CompilerParams(
            dimension_semantics=("parallel", "parallel"),
            vmem_limit_bytes=vmem_limit),
    )(lhs_p, rel_p, rhs_p)

    if B_pad != B or n_pad != n_ent:
        scores = scores[:B, :n_ent]
    return scores, (lhs_e, rel_e, rhs_e)


if __name__ == "__main__":
    import numpy as np

    def _ref(params, x):
        lhs_np = np.asarray(params["lhs"], np.float64)
        rel_np = np.asarray(params["rel"], np.float64)
        rhs_np = np.asarray(params["rhs"], np.float64)
        x_np = np.asarray(x)
        l = lhs_np[x_np[:, 0]]
        r = rel_np[x_np[:, 1]]
        t = rhs_np[x_np[:, 2]]
        return (l * r) @ rhs_np.T, (l, r, t)

    def _make(key, n_ent, n_rel, rank, batch, init_size=0.001):
        k_l, k_r, k_t, k_h, k_q, k_tl = jax.random.split(key, 6)
        params = dict(
            lhs=init_size * jax.random.normal(k_l, (n_ent, rank), jnp.float32),
            rel=init_size * jax.random.normal(k_r, (n_rel, rank), jnp.float32),
            rhs=init_size * jax.random.normal(k_t, (n_ent, rank), jnp.float32),
        )
        x = jnp.stack(
            [
                jax.random.randint(k_h, (batch,), 0, n_ent),
                jax.random.randint(k_q, (batch,), 0, n_rel),
                jax.random.randint(k_tl, (batch,), 0, n_ent),
            ],
            axis=1,
        ).astype(jnp.int32)
        return params, x

    key = jax.random.PRNGKey(0)
    k1, k2 = jax.random.split(key)

    # Case 1: TPU-friendly shapes -> single grid step (no per-step overhead).
    params, x = _make(k1, n_ent=512, n_rel=32, rank=128, batch=128)
    scores, (lhs_e, rel_e, rhs_e) = cp_forward(x, params)
    scores = jax.block_until_ready(scores)
    ref_s, (ref_l, ref_r, ref_t) = _ref(params, x)
    assert scores.shape == (128, 512)
    assert np.allclose(np.asarray(scores, np.float64), ref_s,
                       rtol=1e-2, atol=5e-10), "score mismatch vs reference"
    assert np.array_equal(np.asarray(lhs_e, np.float64), ref_l)
    assert np.array_equal(np.asarray(rel_e, np.float64), ref_r)
    assert np.array_equal(np.asarray(rhs_e, np.float64), ref_t)

    # Case 2: non-multiple batch / entity counts exercise the padding path.
    params2, x2 = _make(k2, n_ent=300, n_rel=11, rank=64, batch=37)
    scores2, _ = cp_forward(x2, params2)
    scores2 = jax.block_until_ready(scores2)
    ref_s2, _ = _ref(params2, x2)
    assert scores2.shape == (37, 300)
    assert np.allclose(np.asarray(scores2, np.float64), ref_s2,
                       rtol=1e-2, atol=5e-10), "padded-path score mismatch"

    print("KERNEL_OK")
</pallas_src>

<mosaic_0001>
module attributes {stable_mosaic.version = 11 : i64} {
  func.func @_cp_score_kernel(%arg0: i32, %arg1: i32, %arg2: memref<128x128xf32, #tpu.memory_space<vmem>>, %arg3: memref<128x128xf32, #tpu.memory_space<vmem>>, %arg4: memref<512x128xf32, #tpu.memory_space<vmem>>, %arg5: memref<128x512xf32, #tpu.memory_space<vmem>>) attributes {dimension_semantics = [#tpu.dimension_semantics<parallel>, #tpu.dimension_semantics<parallel>], iteration_bounds = array<i64: 1, 1>, scalar_prefetch = 0 : i64, scratch_operands = 0 : i64, tpu.core_type = #tpu.core_type<tc>, window_params = [{transform_indices = @transform_0, window_bounds = array<i64: 128, 128>}, {transform_indices = @transform_1, window_bounds = array<i64: 128, 128>}, {transform_indices = @transform_2, window_bounds = array<i64: 512, 128>}, {transform_indices = @transform_3, window_bounds = array<i64: 128, 512>}]} {
    %c0 = arith.constant 0 : index
    %c0_0 = arith.constant 0 : index
    %0 = vector.load %arg2[%c0, %c0_0] : memref<128x128xf32, #tpu.memory_space<vmem>>, vector<128x128xf32>
    %c0_1 = arith.constant 0 : index
    %c0_2 = arith.constant 0 : index
    %1 = vector.load %arg3[%c0_1, %c0_2] : memref<128x128xf32, #tpu.memory_space<vmem>>, vector<128x128xf32>
    %2 = arith.mulf %0, %1 : vector<128x128xf32>
    %c0_3 = arith.constant 0 : index
    %c0_4 = arith.constant 0 : index
    %3 = vector.load %arg4[%c0_3, %c0_4] : memref<512x128xf32, #tpu.memory_space<vmem>>, vector<512x128xf32>
    %cst = arith.constant dense<0.000000e+00> : vector<128x512xf32>
    %4 = tpu.matmul %2, %3, %cst {dimension_numbers = #tpu.dot_dimension_numbers<[1], [1], [0], [0], [0, 0, 1, 0], [], []>} : vector<128x128xf32>, vector<512x128xf32>, vector<128x512xf32> -> vector<128x512xf32>
    %c0_5 = arith.constant 0 : index
    %c0_6 = arith.constant 0 : index
    %5 = vector.load %arg5[%c0_5, %c0_6] : memref<128x512xf32, #tpu.memory_space<vmem>>, vector<128x512xf32>
    tpu.vector_store %arg5[%c0_5, %c0_6], %4 {strides = array<i32>} : memref<128x512xf32, #tpu.memory_space<vmem>>, vector<128x512xf32>,
    return
  }
  func.func @transform_0(%arg0: i32, %arg1: i32) -> (i32, i32) {
    %c0_i32 = arith.constant 0 : i32
    %c0_i32_0 = arith.constant 0 : i32
    return %arg0, %c0_i32 : i32, i32
  }
  func.func @transform_1(%arg0: i32, %arg1: i32) -> (i32, i32) {
    %c0_i32 = arith.constant 0 : i32
    %c0_i32_0 = arith.constant 0 : i32
    return %arg0, %c0_i32 : i32, i32
  }
  func.func @transform_2(%arg0: i32, %arg1: i32) -> (i32, i32) {
    %c0_i32 = arith.constant 0 : i32
    %c0_i32_0 = arith.constant 0 : i32
    return %arg1, %c0_i32 : i32, i32
  }
  func.func @transform_3(%arg0: i32, %arg1: i32) -> (i32, i32) {
    %c0_i32 = arith.constant 0 : i32
    return %arg0, %arg1 : i32, i32
  }
}

</mosaic_0001>

<bundles_post_ra>
// kernel: tpu_custom_call.1
= control target key start
LH: loop header
LB: loop body
LE: loop exit
PB: predicated region body
PF: predicated region fallthrough
CT: control target
= control target key end

     0   :  { %8 = vsyncpa [#allocation3], 0  ;;  %s840_s0 = inlined_call_operand.hbm [shape: f32[128,128], index: 0, kind: input, shape index: {}]   ;;  %s841_s1 = inlined_call_operand.hbm [shape: f32[128,128], index: 1, kind: input, shape index: {}]   ;;  %s842_s2 = inlined_call_operand.hbm [shape: f32[512,128], index: 2, kind: input, shape index: {}]   ;;  %s843_s3 = inlined_call_operand.hbm [shape: f32[128,512], index: 3, kind: output, shape index: {}]  }
   0x1   :  { %9 = vsyncpa [#allocation6], 0 }
   0x2   :  { %10 = vsyncpa [#allocation4], 0  ;;  %s794_s12 = smov [#allocation5]   ;;  %s795_s14 = smov [#allocation2]  }
   0x3   :  { %s28_s13 = sshll.u32 %s794_s12, 4  ;;  %s16_s15 = sshll.u32 %s795_s14, 4  ;;  %s29_s13 = int_to_ptr.vmem [resolvable:$true] %s28_s13  ;;  %s17_s15 = int_to_ptr.vmem [resolvable:$true] %s16_s15 }
   0x4   :  { %s716_s16 = scalar_lea.vmem %s29_s13, 2048  ;;  %p721_p1 = scmp.lt.s32.totalorder %s29_s13, %s29_s13 }
   0x5   :  { %p717_p0 = scmp.ne.s32.totalorder %s29_s13, %s716_s16  ;;  %p722_p2 = scmp.lt.s32.totalorder %s716_s16, %s716_s16 }
   0x7   :  { %p723_p3 = por %p722_p2, %p721_p1 }
   0x9   :  { %p724_p4 = pnand %p723_p3, %p717_p0 }
   0xb   :  { %727 = shalt.err (!%p724_p4)
}
   0xc   :  { %s796_s17 = smov 128   ;;  %s797_s18 = smov 8  }
   0xd   :  { %34 = dma.hbm_to_vmem [thread:$0]  %s841_s1, 2048, %s29_s13, [#allocation6], %s796_s17, %s796_s17, %s797_s18  }
   0xe   :  { %s736_s21 = scalar_lea.vmem %s17_s15, 2048  ;;  %p741_p6 = scmp.lt.s32.totalorder %s17_s15, %s17_s15 }
   0xf   :  { %p737_p5 = scmp.ne.s32.totalorder %s17_s15, %s736_s21  ;;  %p742_p7 = scmp.lt.s32.totalorder %s736_s21, %s736_s21 }
  0x11   :  { %p743_p8 = por %p742_p7, %p741_p6 }
  0x13   :  { %p744_p9 = pnand %p743_p8, %p737_p5 }
  0x15   :  { %747 = shalt.err (!%p744_p9)
}
  0x16   :  { %22 = dma.hbm_to_vmem [thread:$0]  %s840_s0, 2048, %s17_s15, [#allocation3], %s796_s17, %s796_s17, %s797_s18  }
  0x17   :  { %s798_s24 = smov [#allocation7]  }
  0x18   :  { %s40_s25 = sshll.u32 %s798_s24, 4  ;;  %s41_s25 = int_to_ptr.vmem [resolvable:$true] %s40_s25 }
  0x19   :  { %s756_s26 = scalar_lea.vmem %s41_s25, 8192  ;;  %p761_p11 = scmp.lt.s32.totalorder %s41_s25, %s41_s25 }
  0x1a   :  { %p757_p10 = scmp.ne.s32.totalorder %s41_s25, %s756_s26  ;;  %p762_p12 = scmp.lt.s32.totalorder %s756_s26, %s756_s26 }
  0x1c   :  { %p763_p13 = por %p762_p12, %p761_p11 }
  0x1e   :  { %p764_p0 = pnand %p763_p13, %p757_p10 }
  0x20   :  { %767 = shalt.err (!%p764_p0)
}
  0x21   :  { %46 = dma.hbm_to_vmem [thread:$0]  %s842_s2, 8192, %s41_s25, [#allocation6], %s796_s17, %s796_s17, %s797_s18  }
  0x22   :  { %788 = dma.done.wait [#allocation3], 2048  }
  0x23   :  { %789 = vsyncadd [#allocation3], 4294965248 }
  0x24   :  { %790 = dma.done.wait [#allocation6], 10240  }
  0x25   :  { %791 = vsyncadd [#allocation6], 4294957056  ;;  %v135_v0 = vld [vmem:[#allocation7 + $0xf8] sm:$0xff]  ;;  %v134_v4 = vld [vmem:[#allocation7 + $0xf0] sm:$0xff]  ;;  %s799_s0 = smov [#allocation8]  }
  0x26   :  { %v167_v1 = vld [vmem:[#allocation7 + $0x1f8] sm:$0xff]  ;;  %572 = vmatprep.subr.mxu0 %v135_v0  ;;  %v166_v5 = vld [vmem:[#allocation7 + $0x1f0] sm:$0xff]  ;;  %v133_v8 = vld [vmem:[#allocation7 + $0xe8] sm:$0xff]  ;;  %s559_s2 = sshll.u32 %s799_s0, 4  ;;  %s560_s2 = int_to_ptr.vmem [resolvable:$true] %s559_s2 }
  0x27   :  { %v119_v2 = vld [vmem:[#allocation7 + $0x78] sm:$0xff]  ;;  %636 = vmatprep.subr.mxu1 %v167_v1  ;;  %v118_v6 = vld [vmem:[#allocation7 + $0x70] sm:$0xff]  ;;  %v165_v9 = vld [vmem:[#allocation7 + $0x1e8] sm:$0xff]  ;;  %s768_s28 = scalar_lea.vmem %s560_s2, 8192  ;;  %p773_p2 = scmp.lt.s32.totalorder %s560_s2, %s560_s2 }
  0x28   :  { %v151_v3 = vld [vmem:[#allocation7 + $0x178] sm:$0xff]  ;;  %573 = vmatpush3.xpose.msra.mxu0 %v119_v2  ;;  %v150_v7 = vld [vmem:[#allocation7 + $0x170] sm:$0xff]  ;;  %v117_v10 = vld [vmem:[#allocation7 + $0x68] sm:$0xff]  ;;  %p769_p1 = scmp.ne.s32.totalorder %s560_s2, %s768_s28  ;;  %p774_p3 = scmp.lt.s32.totalorder %s768_s28, %s768_s28 }
  0x29   :  { %637 = vmatpush3.xpose.msra.mxu1 %v151_v3  ;;  %574 = vmatprep.subr.mxu0 %v134_v4  ;;  %v149_v11 = vld [vmem:[#allocation7 + $0x168] sm:$0xff]  ;;  %v132_v12 = vld [vmem:[#allocation7 + $0xe0] sm:$0xff]  ;;  %v131_v16 = vld [vmem:[#allocation7 + $0xd8] sm:$0xff] }
  0x2a   :  { %638 = vmatprep.subr.mxu1 %v166_v5  ;;  %v164_v13 = vld [vmem:[#allocation7 + $0x1e0] sm:$0xff]  ;;  %v163_v17 = vld [vmem:[#allocation7 + $0x1d8] sm:$0xff]  ;;  %v130_v20 = vld [vmem:[#allocation7 + $0xd0] sm:$0xff]  ;;  %p775_p4 = por %p774_p3, %p773_p2 }
  0x2b   :  { %v116_v14 = vld [vmem:[#allocation7 + $0x60] sm:$0xff]  ;;  %v115_v18 = vld [vmem:[#allocation7 + $0x58] sm:$0xff]  ;;  %v162_v21 = vld [vmem:[#allocation7 + $0x1d0] sm:$0xff] }
  0x2c   :  { %575 = vmatpush3.xpose.msra.mxu0 %v118_v6  ;;  %v148_v15 = vld [vmem:[#allocation7 + $0x160] sm:$0xff]  ;;  %v147_v19 = vld [vmem:[#allocation7 + $0x158] sm:$0xff]  ;;  %v114_v22 = vld [vmem:[#allocation7 + $0x50] sm:$0xff]  ;;  %p776_p5 = pnand %p775_p4, %p769_p1 }
  0x2d   :  { %639 = vmatpush3.xpose.msra.mxu1 %v150_v7  ;;  %576 = vmatprep.subr.mxu0 %v133_v8  ;;  %v146_v23 = vld [vmem:[#allocation7 + $0x150] sm:$0xff]  ;;  %v129_v24 = vld [vmem:[#allocation7 + $0xc8] sm:$0xff]  ;;  %v56_v26 = vld [vmem:[#allocation2] sm:$0xff] }
  0x2e   :  { %640 = vmatprep.subr.mxu1 %v165_v9  ;;  %v161_v25 = vld [vmem:[#allocation7 + $0x1c8] sm:$0xff]  ;;  %v72_v27 = vld [vmem:[#allocation5] sm:$0xff]  ;;  %v127_v35 = vld [vmem:[#allocation7 + $0xb8] sm:$0xff] }
  0x2f   :  { %v831_v28 = vmul.f32 %v72_v27, %v56_v26  ;;  %v113_v29 = vld [vmem:[#allocation7 + $0x48] sm:$0xff]  ;;  %v128_v31 = vld [vmem:[#allocation7 + $0xc0] sm:$0xff]  ;;  %v159_v36 = vld [vmem:[#allocation7 + $0x1b8] sm:$0xff] }
  0x30   :  { %577 = vmatpush3.xpose.msra.mxu0 %v117_v10  ;;  %v145_v30 = vld [vmem:[#allocation7 + $0x148] sm:$0xff]  ;;  %v160_v32 = vld [vmem:[#allocation7 + $0x1c0] sm:$0xff]  ;;  %v111_v37 = vld [vmem:[#allocation7 + $0x38] sm:$0xff] }
  0x31   :  { %641 = vmatpush3.xpose.msra.mxu1 %v149_v11  ;;  %578 = vmatprep.subr.mxu0 %v132_v12  ;;  %v112_v33 = vld [vmem:[#allocation7 + $0x40] sm:$0xff]  ;;  %v143_v38 = vld [vmem:[#allocation7 + $0x138] sm:$0xff]  ;;  %v126_v39 = vld [vmem:[#allocation7 + $0xb0] sm:$0xff] }
  0x32   :  { %642 = vmatprep.subr.mxu1 %v164_v13  ;;  %604 = vmatprep.mubr.f32.mxu0 %v831_v28  ;;  %v144_v34 = vld [vmem:[#allocation7 + $0x140] sm:$0xff]  ;;  %v158_v40 = vld [vmem:[#allocation7 + $0x1b0] sm:$0xff]  ;;  %v125_v43 = vld [vmem:[#allocation7 + $0xa8] sm:$0xff] }
  0x33   :  { %668 = vmatprep.mubr.f32.mxu1 %v831_v28  ;;  %v110_v41 = vld [vmem:[#allocation7 + $0x30] sm:$0xff]  ;;  %v157_v44 = vld [vmem:[#allocation7 + $0x1a8] sm:$0xff]  ;;  %v124_v47 = vld [vmem:[#allocation7 + $0xa0] sm:$0xff] }
  0x34   :  { %579 = vmatpush3.xpose.msra.mxu0 %v116_v14  ;;  %v142_v42 = vld [vmem:[#allocation7 + $0x130] sm:$0xff]  ;;  %v109_v45 = vld [vmem:[#allocation7 + $0x28] sm:$0xff]  ;;  %v156_v48 = vld [vmem:[#allocation7 + $0x1a0] sm:$0xff] }
  0x35   :  { %643 = vmatpush3.xpose.msra.mxu1 %v148_v15  ;;  %580 = vmatprep.subr.mxu0 %v131_v16  ;;  %v141_v46 = vld [vmem:[#allocation7 + $0x128] sm:$0xff]  ;;  %v108_v49 = vld [vmem:[#allocation7 + $0x20] sm:$0xff]  ;;  %v123_v51 = vld [vmem:[#allocation7 + $0x98] sm:$0xff] }
  0x36   :  { %644 = vmatprep.subr.mxu1 %v163_v17  ;;  %v140_v50 = vld [vmem:[#allocation7 + $0x120] sm:$0xff]  ;;  %v155_v52 = vld [vmem:[#allocation7 + $0x198] sm:$0xff]  ;;  %v122_v55 = vld [vmem:[#allocation7 + $0x90] sm:$0xff] }
  0x37   :  { %v107_v53 = vld [vmem:[#allocation7 + $0x18] sm:$0xff]  ;;  %v154_v56 = vld [vmem:[#allocation7 + $0x190] sm:$0xff]  ;;  %v121_v59 = vld [vmem:[#allocation7 + $0x88] sm:$0xff] }
  0x38   :  { %581 = vmatpush3.xpose.msra.mxu0 %v115_v18  ;;  %v139_v54 = vld [vmem:[#allocation7 + $0x118] sm:$0xff]  ;;  %v106_v57 = vld [vmem:[#allocation7 + $0x10] sm:$0xff]  ;;  %v153_v60 = vld [vmem:[#allocation7 + $0x188] sm:$0xff] }
  0x39   :  { %645 = vmatpush3.xpose.msra.mxu1 %v147_v19  ;;  %582 = vmatprep.subr.mxu0 %v130_v20  ;;  %v138_v58 = vld [vmem:[#allocation7 + $0x110] sm:$0xff]  ;;  %v105_v61 = vld [vmem:[#allocation7 + $0x8] sm:$0xff]  ;;  %v120_v63 = vld [vmem:[#allocation7 + $0x80] sm:$0xff] }
  0x3a   :  { %646 = vmatprep.subr.mxu1 %v162_v21  ;;  %v137_v62 = vld [vmem:[#allocation7 + $0x108] sm:$0xff]  ;;  %v152_v0 = vld [vmem:[#allocation7 + $0x180] sm:$0xff]  ;;  %v58_v6 = vld [vmem:[#allocation2 + $0x10] sm:$0xff] }
  0x3b   :  { %v104_v1 = vld [vmem:[#allocation7] sm:$0xff]  ;;  %v57_v3 = vld [vmem:[#allocation2 + $0x8] sm:$0xff]  ;;  %v74_v7 = vld [vmem:[#allocation5 + $0x10] sm:$0xff] }
  0x3c   :  { %583 = vmatpush3.xpose.msra.mxu0 %v114_v22  ;;  %v136_v2 = vld [vmem:[#allocation7 + $0x100] sm:$0xff]  ;;  %v73_v4 = vld [vmem:[#allocation5 + $0x8] sm:$0xff]  ;;  %v90_v8 = vmul.f32 %v74_v7, %v58_v6  ;;  %v59_v9 = vld [vmem:[#allocation2 + $0x18] sm:$0xff] }
  0x3d   :  { %647 = vmatpush3.xpose.msra.mxu1 %v146_v23  ;;  %584 = vmatprep.subr.mxu0 %v129_v24  ;;  %v89_v5 = vmul.f32 %v73_v4, %v57_v3  ;;  %v75_v10 = vld [vmem:[#allocation5 + $0x18] sm:$0xff]  ;;  %v60_v12 = vld [vmem:[#allocation2 + $0x20] sm:$0xff]  ;;  %v61_v15 = vld [vmem:[#allocation2 + $0x28] sm:$0xff] }
  0x3e   :  { %648 = vmatprep.subr.mxu1 %v161_v25  ;;  %v91_v11 = vmul.f32 %v75_v10, %v59_v9  ;;  %v76_v13 = vld [vmem:[#allocation5 + $0x20] sm:$0xff]  ;;  %v77_v16 = vld [vmem:[#allocation5 + $0x28] sm:$0xff]  ;;  %v62_v18 = vld [vmem:[#allocation2 + $0x30] sm:$0xff] }
  0x3f   :  { %v92_v14 = vmul.f32 %v76_v13, %v60_v12  ;;  %v93_v17 = vmul.f32 %v77_v16, %v61_v15  ;;  %v78_v19 = vld [vmem:[#allocation5 + $0x30] sm:$0xff]  ;;  %v63_v21 = vld [vmem:[#allocation2 + $0x38] sm:$0xff]  ;;  %v64_v24 = vld [vmem:[#allocation2 + $0x40] sm:$0xff] }
  0x40   :  { %585 = vmatpush3.xpose.msra.mxu0 %v113_v29  ;;  %v94_v20 = vmul.f32 %v78_v19, %v62_v18  ;;  %v79_v22 = vld [vmem:[#allocation5 + $0x38] sm:$0xff]  ;;  %v80_v25 = vld [vmem:[#allocation5 + $0x40] sm:$0xff]  ;;  %v65_v27 = vld [vmem:[#allocation2 + $0x48] sm:$0xff] }
  0x41   :  { %649 = vmatpush3.xpose.msra.mxu1 %v145_v30  ;;  %586 = vmatprep.subr.mxu0 %v128_v31  ;;  %v95_v23 = vmul.f32 %v79_v22, %v63_v21  ;;  %v96_v26 = vmul.f32 %v80_v25, %v64_v24  ;;  %v66_v30 = vld [vmem:[#allocation2 + $0x50] sm:$0xff] }
  0x42   :  { %650 = vmatprep.subr.mxu1 %v160_v32  ;;  %v82_v31 = vld [vmem:[#allocation5 + $0x50] sm:$0xff] }
  0x43   :  { %v98_v32 = vmul.f32 %v82_v31, %v66_v30 }
  0x44   :  { %587 = vmatpush3.xpose.msra.mxu0 %v112_v33  ;;  %v67_v33 = vld [vmem:[#allocation2 + $0x58] sm:$0xff] }
  0x45   :  { %651 = vmatpush3.xpose.msra.mxu1 %v144_v34  ;;  %588 = vmatprep.subr.mxu0 %v127_v35  ;;  %v83_v34 = vld [vmem:[#allocation5 + $0x58] sm:$0xff] }
  0x46   :  { %652 = vmatprep.subr.mxu1 %v159_v36  ;;  %v99_v35 = vmul.f32 %v83_v34, %v67_v33  ;;  %v68_v36 = vld [vmem:[#allocation2 + $0x60] sm:$0xff] }
  0x48   :  { %589 = vmatpush3.xpose.msra.mxu0 %v111_v37  ;;  %v84_v37 = vld [vmem:[#allocation5 + $0x60] sm:$0xff] }
  0x49   :  { %653 = vmatpush3.xpose.msra.mxu1 %v143_v38  ;;  %590 = vmatprep.subr.mxu0 %v126_v39  ;;  %v100_v38 = vmul.f32 %v84_v37, %v68_v36  ;;  %v69_v39 = vld [vmem:[#allocation2 + $0x68] sm:$0xff] }
  0x4a   :  { %654 = vmatprep.subr.mxu1 %v158_v40  ;;  %v85_v40 = vld [vmem:[#allocation5 + $0x68] sm:$0xff] }
  0x4c   :  { %591 = vmatpush3.xpose.msra.mxu0 %v110_v41  ;;  %v101_v41 = vmul.f32 %v85_v40, %v69_v39 }
  0x4d   :  { %655 = vmatpush3.xpose.msra.mxu1 %v142_v42  ;;  %592 = vmatprep.subr.mxu0 %v125_v43  ;;  %v70_v42 = vld [vmem:[#allocation2 + $0x70] sm:$0xff] }
  0x4e   :  { %656 = vmatprep.subr.mxu1 %v157_v44  ;;  %v86_v43 = vld [vmem:[#allocation5 + $0x70] sm:$0xff] }
  0x4f   :  { %v102_v44 = vmul.f32 %v86_v43, %v70_v42 }
  0x50   :  { %593 = vmatpush3.xpose.msra.mxu0 %v109_v45  ;;  %v71_v45 = vld [vmem:[#allocation2 + $0x78] sm:$0xff] }
  0x51   :  { %657 = vmatpush3.xpose.msra.mxu1 %v141_v46  ;;  %594 = vmatprep.subr.mxu0 %v124_v47  ;;  %v87_v46 = vld [vmem:[#allocation5 + $0x78] sm:$0xff] }
  0x52   :  { %658 = vmatprep.subr.mxu1 %v156_v48  ;;  %v103_v47 = vmul.f32 %v87_v46, %v71_v45 }
  0x54   :  { %595 = vmatpush3.xpose.msra.mxu0 %v108_v49 }
  0x55   :  { %659 = vmatpush3.xpose.msra.mxu1 %v140_v50  ;;  %596 = vmatprep.subr.mxu0 %v123_v51 }
  0x56   :  { %660 = vmatprep.subr.mxu1 %v155_v52 }
  0x58   :  { %597 = vmatpush3.xpose.msra.mxu0 %v107_v53 }
  0x59   :  { %661 = vmatpush3.xpose.msra.mxu1 %v139_v54  ;;  %598 = vmatprep.subr.mxu0 %v122_v55 }
  0x5a   :  { %662 = vmatprep.subr.mxu1 %v154_v56 }
  0x5c   :  { %599 = vmatpush3.xpose.msra.mxu0 %v106_v57 }
  0x5d   :  { %663 = vmatpush3.xpose.msra.mxu1 %v138_v58  ;;  %600 = vmatprep.subr.mxu0 %v121_v59 }
  0x5e   :  { %664 = vmatprep.subr.mxu1 %v153_v60 }
  0x60   :  { %601 = vmatpush3.xpose.msra.mxu0 %v105_v61 }
  0x61   :  { %665 = vmatpush3.xpose.msra.mxu1 %v137_v62  ;;  %602 = vmatprep.subr.mxu0 %v120_v63 }
  0x62   :  { %666 = vmatprep.subr.mxu1 %v152_v0 }
  0x64   :  { %603 = vmatpush3.xpose.msra.mxu0 %v104_v1 }
  0x65   :  { %667 = vmatpush3.xpose.msra.mxu1 %v136_v2 }
  0x67   :  { %605 = vmatmul.mubr.f32.vlgmr.msra.gmra.mxu0 %v831_v28 }
  0x68   :  { %669 = vmatmul.mubr.f32.vlgmr.msra.gmra.mxu1 %v831_v28  ;;  %606 = vmatprep.mubr.f32.mxu0 %v89_v5  ;;  %v81_v28 = vld [vmem:[#allocation5 + $0x48] sm:$0xff] }
  0x69   :  { %670 = vmatprep.mubr.f32.mxu1 %v89_v5  ;;  %v97_v29 = vmul.f32 %v81_v28, %v65_v27 }
  0x6b   :  { %607 = vmatmul.mubr.f32.gmra.mxu0 %v89_v5 }
  0x6c   :  { %671 = vmatmul.mubr.f32.gmra.mxu1 %v89_v5  ;;  %608 = vmatprep.mubr.f32.mxu0 %v90_v8 }
  0x6d   :  { %672 = vmatprep.mubr.f32.mxu1 %v90_v8 }
  0x6f   :  { %609 = vmatmul.mubr.f32.gmra.mxu0 %v90_v8 }
  0x70   :  { %673 = vmatmul.mubr.f32.gmra.mxu1 %v90_v8  ;;  %610 = vmatprep.mubr.f32.mxu0 %v91_v11 }
  0x71   :  { %674 = vmatprep.mubr.f32.mxu1 %v91_v11 }
  0x73   :  { %611 = vmatmul.mubr.f32.gmra.mxu0 %v91_v11 }
  0x74   :  { %675 = vmatmul.mubr.f32.gmra.mxu1 %v91_v11  ;;  %612 = vmatprep.mubr.f32.mxu0 %v92_v14 }
  0x75   :  { %676 = vmatprep.mubr.f32.mxu1 %v92_v14 }
  0x77   :  { %613 = vmatmul.mubr.f32.gmra.mxu0 %v92_v14 }
  0x78   :  { %677 = vmatmul.mubr.f32.gmra.mxu1 %v92_v14  ;;  %614 = vmatprep.mubr.f32.mxu0 %v93_v17 }
  0x79   :  { %678 = vmatprep.mubr.f32.mxu1 %v93_v17 }
  0x7b   :  { %615 = vmatmul.mubr.f32.gmra.mxu0 %v93_v17 }
  0x7c   :  { %679 = vmatmul.mubr.f32.gmra.mxu1 %v93_v17  ;;  %616 = vmatprep.mubr.f32.mxu0 %v94_v20 }
  0x7d   :  { %680 = vmatprep.mubr.f32.mxu1 %v94_v20 }
  0x7f   :  { %617 = vmatmul.mubr.f32.gmra.mxu0 %v94_v20 }
  0x80   :  { %681 = vmatmul.mubr.f32.gmra.mxu1 %v94_v20  ;;  %618 = vmatprep.mubr.f32.mxu0 %v95_v23 }
  0x81   :  { %682 = vmatprep.mubr.f32.mxu1 %v95_v23 }
  0x83   :  { %619 = vmatmul.mubr.f32.gmra.mxu0 %v95_v23 }
  0x84   :  { %683 = vmatmul.mubr.f32.gmra.mxu1 %v95_v23  ;;  %620 = vmatprep.mubr.f32.mxu0 %v96_v26 }
  0x85   :  { %684 = vmatprep.mubr.f32.mxu1 %v96_v26 }
  0x87   :  { %621 = vmatmul.mubr.f32.gmra.mxu0 %v96_v26 }
  0x88   :  { %685 = vmatmul.mubr.f32.gmra.mxu1 %v96_v26  ;;  %622 = vmatprep.mubr.f32.mxu0 %v97_v29 }
  0x89   :  { %686 = vmatprep.mubr.f32.mxu1 %v97_v29 }
  0x8b   :  { %623 = vmatmul.mubr.f32.gmra.mxu0 %v97_v29 }
  0x8c   :  { %687 = vmatmul.mubr.f32.gmra.mxu1 %v97_v29  ;;  %624 = vmatprep.mubr.f32.mxu0 %v98_v32 }
  0x8d   :  { %688 = vmatprep.mubr.f32.mxu1 %v98_v32 }
  0x8f   :  { %625 = vmatmul.mubr.f32.gmra.mxu0 %v98_v32 }
  0x90   :  { %689 = vmatmul.mubr.f32.gmra.mxu1 %v98_v32  ;;  %626 = vmatprep.mubr.f32.mxu0 %v99_v35 }
  0x91   :  { %690 = vmatprep.mubr.f32.mxu1 %v99_v35 }
  0x93   :  { %627 = vmatmul.mubr.f32.gmra.mxu0 %v99_v35 }
  0x94   :  { %691 = vmatmul.mubr.f32.gmra.mxu1 %v99_v35  ;;  %628 = vmatprep.mubr.f32.mxu0 %v100_v38 }
  0x95   :  { %692 = vmatprep.mubr.f32.mxu1 %v100_v38 }
  0x97   :  { %629 = vmatmul.mubr.f32.gmra.mxu0 %v100_v38 }
  0x98   :  { %693 = vmatmul.mubr.f32.gmra.mxu1 %v100_v38  ;;  %630 = vmatprep.mubr.f32.mxu0 %v101_v41 }
  0x99   :  { %694 = vmatprep.mubr.f32.mxu1 %v101_v41 }
  0x9b   :  { %631 = vmatmul.mubr.f32.gmra.mxu0 %v101_v41 }
  0x9c   :  { %695 = vmatmul.mubr.f32.gmra.mxu1 %v101_v41  ;;  %632 = vmatprep.mubr.f32.mxu0 %v102_v44 }
  0x9d   :  { %696 = vmatprep.mubr.f32.mxu1 %v102_v44 }
  0x9f   :  { %633 = vmatmul.mubr.f32.gmra.mxu0 %v102_v44 }
  0xa0   :  { %697 = vmatmul.mubr.f32.gmra.mxu1 %v102_v44  ;;  %634 = vmatprep.mubr.f32.mxu0 %v103_v47 }
  0xa1   :  { %698 = vmatprep.mubr.f32.mxu1 %v103_v47 }
  0xa3   :  { %635 = vmatmul.mubr.f32.gmra.mxu0 %v103_v47 }
  0xa4   :  { %699 = vmatmul.mubr.f32.gmra.mxu1 %v103_v47 }
 0x127   :  { %v234_v48 = vpop.f32.mrf.mxu0 }
 0x128   :  { %v395_v49 = vpop.f32.mrf.mxu1  ;;  %490 = vst [vmem:[#allocation8] sm:$0xff] %v234_v48 }
 0x129   :  { %492 = vst [vmem:[#allocation8 + $0x10] sm:$0xff] %v395_v49  ;;  %v236_v50 = vpop.f32.mrf.mxu0 }
 0x12a   :  { %v397_v51 = vpop.f32.mrf.mxu1  ;;  %491 = vst [vmem:[#allocation8 + $0x8] sm:$0xff] %v236_v50 }
 0x12b   :  { %493 = vst [vmem:[#allocation8 + $0x18] sm:$0xff] %v397_v51  ;;  %v240_v52 = vpop.f32.mrf.mxu0 }
 0x12c   :  { %v401_v53 = vpop.f32.mrf.mxu1  ;;  %494 = vst [vmem:[#allocation8 + $0x20] sm:$0xff] %v240_v52 }
 0x12d   :  { %496 = vst [vmem:[#allocation8 + $0x30] sm:$0xff] %v401_v53  ;;  %v242_v54 = vpop.f32.mrf.mxu0 }
 0x12e   :  { %v403_v55 = vpop.f32.mrf.mxu1  ;;  %495 = vst [vmem:[#allocation8 + $0x28] sm:$0xff] %v242_v54 }
 0x12f   :  { %497 = vst [vmem:[#allocation8 + $0x38] sm:$0xff] %v403_v55  ;;  %v246_v56 = vpop.f32.mrf.mxu0 }
 0x130   :  { %v407_v57 = vpop.f32.mrf.mxu1  ;;  %498 = vst [vmem:[#allocation8 + $0x40] sm:$0xff] %v246_v56 }
 0x131   :  { %500 = vst [vmem:[#allocation8 + $0x50] sm:$0xff] %v407_v57  ;;  %v248_v58 = vpop.f32.mrf.mxu0 }
 0x132   :  { %v409_v59 = vpop.f32.mrf.mxu1  ;;  %499 = vst [vmem:[#allocation8 + $0x48] sm:$0xff] %v248_v58 }
 0x133   :  { %501 = vst [vmem:[#allocation8 + $0x58] sm:$0xff] %v409_v59  ;;  %v252_v60 = vpop.f32.mrf.mxu0 }
 0x134   :  { %v413_v61 = vpop.f32.mrf.mxu1  ;;  %502 = vst [vmem:[#allocation8 + $0x60] sm:$0xff] %v252_v60 }
 0x135   :  { %504 = vst [vmem:[#allocation8 + $0x70] sm:$0xff] %v413_v61  ;;  %v254_v62 = vpop.f32.mrf.mxu0 }
 0x136   :  { %v415_v63 = vpop.f32.mrf.mxu1  ;;  %503 = vst [vmem:[#allocation8 + $0x68] sm:$0xff] %v254_v62 }
 0x137   :  { %505 = vst [vmem:[#allocation8 + $0x78] sm:$0xff] %v415_v63  ;;  %v258_v0 = vpop.f32.mrf.mxu0 }
 0x138   :  { %v419_v1 = vpop.f32.mrf.mxu1  ;;  %506 = vst [vmem:[#allocation8 + $0x80] sm:$0xff] %v258_v0 }
 0x139   :  { %508 = vst [vmem:[#allocation8 + $0x90] sm:$0xff] %v419_v1  ;;  %v260_v2 = vpop.f32.mrf.mxu0 }
 0x13a   :  { %v421_v3 = vpop.f32.mrf.mxu1  ;;  %507 = vst [vmem:[#allocation8 + $0x88] sm:$0xff] %v260_v2 }
 0x13b   :  { %509 = vst [vmem:[#allocation8 + $0x98] sm:$0xff] %v421_v3  ;;  %v264_v4 = vpop.f32.mrf.mxu0 }
 0x13c   :  { %v425_v5 = vpop.f32.mrf.mxu1  ;;  %510 = vst [vmem:[#allocation8 + $0xa0] sm:$0xff] %v264_v4 }
 0x13d   :  { %512 = vst [vmem:[#allocation8 + $0xb0] sm:$0xff] %v425_v5  ;;  %v266_v6 = vpop.f32.mrf.mxu0 }
 0x13e   :  { %v427_v7 = vpop.f32.mrf.mxu1  ;;  %511 = vst [vmem:[#allocation8 + $0xa8] sm:$0xff] %v266_v6 }
 0x13f   :  { %513 = vst [vmem:[#allocation8 + $0xb8] sm:$0xff] %v427_v7  ;;  %v270_v8 = vpop.f32.mrf.mxu0 }
 0x140   :  { %v431_v9 = vpop.f32.mrf.mxu1  ;;  %514 = vst [vmem:[#allocation8 + $0xc0] sm:$0xff] %v270_v8 }
 0x141   :  { %516 = vst [vmem:[#allocation8 + $0xd0] sm:$0xff] %v431_v9  ;;  %v272_v10 = vpop.f32.mrf.mxu0 }
 0x142   :  { %v433_v11 = vpop.f32.mrf.mxu1  ;;  %515 = vst [vmem:[#allocation8 + $0xc8] sm:$0xff] %v272_v10 }
 0x143   :  { %517 = vst [vmem:[#allocation8 + $0xd8] sm:$0xff] %v433_v11  ;;  %v276_v12 = vpop.f32.mrf.mxu0 }
 0x144   :  { %v437_v13 = vpop.f32.mrf.mxu1  ;;  %518 = vst [vmem:[#allocation8 + $0xe0] sm:$0xff] %v276_v12 }
 0x145   :  { %520 = vst [vmem:[#allocation8 + $0xf0] sm:$0xff] %v437_v13  ;;  %v278_v14 = vpop.f32.mrf.mxu0 }
 0x146   :  { %v439_v15 = vpop.f32.mrf.mxu1  ;;  %519 = vst [vmem:[#allocation8 + $0xe8] sm:$0xff] %v278_v14 }
 0x147   :  { %521 = vst [vmem:[#allocation8 + $0xf8] sm:$0xff] %v439_v15  ;;  %v282_v16 = vpop.f32.mrf.mxu0 }
 0x148   :  { %v443_v17 = vpop.f32.mrf.mxu1  ;;  %522 = vst [vmem:[#allocation8 + $0x100] sm:$0xff] %v282_v16 }
 0x149   :  { %524 = vst [vmem:[#allocation8 + $0x110] sm:$0xff] %v443_v17  ;;  %v284_v18 = vpop.f32.mrf.mxu0 }
 0x14a   :  { %v445_v19 = vpop.f32.mrf.mxu1  ;;  %523 = vst [vmem:[#allocation8 + $0x108] sm:$0xff] %v284_v18 }
 0x14b   :  { %525 = vst [vmem:[#allocation8 + $0x118] sm:$0xff] %v445_v19  ;;  %v288_v20 = vpop.f32.mrf.mxu0 }
 0x14c   :  { %v449_v21 = vpop.f32.mrf.mxu1  ;;  %526 = vst [vmem:[#allocation8 + $0x120] sm:$0xff] %v288_v20 }
 0x14d   :  { %528 = vst [vmem:[#allocation8 + $0x130] sm:$0xff] %v449_v21  ;;  %v290_v22 = vpop.f32.mrf.mxu0 }
 0x14e   :  { %v451_v23 = vpop.f32.mrf.mxu1  ;;  %527 = vst [vmem:[#allocation8 + $0x128] sm:$0xff] %v290_v22 }
 0x14f   :  { %529 = vst [vmem:[#allocation8 + $0x138] sm:$0xff] %v451_v23  ;;  %v294_v24 = vpop.f32.mrf.mxu0 }
 0x150   :  { %v455_v25 = vpop.f32.mrf.mxu1  ;;  %530 = vst [vmem:[#allocation8 + $0x140] sm:$0xff] %v294_v24 }
 0x151   :  { %532 = vst [vmem:[#allocation8 + $0x150] sm:$0xff] %v455_v25  ;;  %v296_v26 = vpop.f32.mrf.mxu0 }
 0x152   :  { %v457_v27 = vpop.f32.mrf.mxu1  ;;  %531 = vst [vmem:[#allocation8 + $0x148] sm:$0xff] %v296_v26 }
 0x153   :  { %533 = vst [vmem:[#allocation8 + $0x158] sm:$0xff] %v457_v27  ;;  %v300_v28 = vpop.f32.mrf.mxu0 }
 0x154   :  { %v461_v29 = vpop.f32.mrf.mxu1  ;;  %534 = vst [vmem:[#allocation8 + $0x160] sm:$0xff] %v300_v28 }
 0x155   :  { %536 = vst [vmem:[#allocation8 + $0x170] sm:$0xff] %v461_v29  ;;  %v302_v30 = vpop.f32.mrf.mxu0 }
 0x156   :  { %v463_v31 = vpop.f32.mrf.mxu1  ;;  %535 = vst [vmem:[#allocation8 + $0x168] sm:$0xff] %v302_v30 }
 0x157   :  { %537 = vst [vmem:[#allocation8 + $0x178] sm:$0xff] %v463_v31  ;;  %v306_v32 = vpop.f32.mrf.mxu0 }
 0x158   :  { %v467_v33 = vpop.f32.mrf.mxu1  ;;  %538 = vst [vmem:[#allocation8 + $0x180] sm:$0xff] %v306_v32 }
 0x159   :  { %540 = vst [vmem:[#allocation8 + $0x190] sm:$0xff] %v467_v33  ;;  %v308_v34 = vpop.f32.mrf.mxu0 }
 0x15a   :  { %v469_v35 = vpop.f32.mrf.mxu1  ;;  %539 = vst [vmem:[#allocation8 + $0x188] sm:$0xff] %v308_v34 }
 0x15b   :  { %541 = vst [vmem:[#allocation8 + $0x198] sm:$0xff] %v469_v35  ;;  %v312_v36 = vpop.f32.mrf.mxu0 }
 0x15c   :  { %v473_v37 = vpop.f32.mrf.mxu1  ;;  %542 = vst [vmem:[#allocation8 + $0x1a0] sm:$0xff] %v312_v36 }
 0x15d   :  { %544 = vst [vmem:[#allocation8 + $0x1b0] sm:$0xff] %v473_v37  ;;  %v314_v38 = vpop.f32.mrf.mxu0 }
 0x15e   :  { %v475_v39 = vpop.f32.mrf.mxu1  ;;  %543 = vst [vmem:[#allocation8 + $0x1a8] sm:$0xff] %v314_v38 }
 0x15f   :  { %545 = vst [vmem:[#allocation8 + $0x1b8] sm:$0xff] %v475_v39  ;;  %v318_v40 = vpop.f32.mrf.mxu0 }
 0x160   :  { %v479_v41 = vpop.f32.mrf.mxu1  ;;  %546 = vst [vmem:[#allocation8 + $0x1c0] sm:$0xff] %v318_v40 }
 0x161   :  { %548 = vst [vmem:[#allocation8 + $0x1d0] sm:$0xff] %v479_v41  ;;  %v320_v42 = vpop.f32.mrf.mxu0 }
 0x162   :  { %v481_v43 = vpop.f32.mrf.mxu1  ;;  %547 = vst [vmem:[#allocation8 + $0x1c8] sm:$0xff] %v320_v42 }
 0x163   :  { %549 = vst [vmem:[#allocation8 + $0x1d8] sm:$0xff] %v481_v43  ;;  %v324_v44 = vpop.f32.mrf.mxu0 }
 0x164   :  { %v485_v45 = vpop.f32.mrf.mxu1  ;;  %550 = vst [vmem:[#allocation8 + $0x1e0] sm:$0xff] %v324_v44 }
 0x165   :  { %552 = vst [vmem:[#allocation8 + $0x1f0] sm:$0xff] %v485_v45  ;;  %v326_v46 = vpop.f32.mrf.mxu0 }
 0x166   :  { %v487_v47 = vpop.f32.mrf.mxu1  ;;  %551 = vst [vmem:[#allocation8 + $0x1e8] sm:$0xff] %v326_v46 }
 0x167   :  { %553 = vst [vmem:[#allocation8 + $0x1f8] sm:$0xff] %v487_v47 }
 0x168   :  { %779 = shalt.err (!%p776_p5)
}
 0x169   :  { %s800_s29 = smov 512   ;;  %s801_s30 = smov 32  }
 0x16a   :  { %565 = dma.vmem_to_hbm [thread:$0]  %s560_s2, 8192, %s843_s3, [#allocation4], %s800_s29, %s800_s29, %s801_s30  }
 0x16b   :  { %792 = dma.done.wait [#allocation4], 8192  }
 0x16c   :  { %793 = vsyncadd [#allocation4], 4294959104 }
 0x16d   :  { %569 = vsyncpa [#allocation3], 1 }
 0x16e   :  { %570 = vsyncpa [#allocation6], 1 }
 0x16f   :  { %571 = vsyncpa [#allocation4], 1 }

</bundles_post_ra>
